<compile_context>
chip_gen: v7x
topology: tpu7x:2x2x1
jax: 0.10.0
libtpu: 0.0.40
codegen_flags: <defaults>
</compile_context>

<pallas_src>
import functools

import jax
import jax.numpy as jnp
from jax.experimental import pallas as pl
from jax.experimental.pallas import tpu as pltpu


def _round_up(n, mult):
    return ((n + mult - 1) // mult) * mult


def _lsplm_kernel(xt_ref, wc_ref, bc_ref, o_ref, *, m):
    # xt_ref: (F, TB)  bf16  -- batch on the lane axis
    # wc_ref: (2m, F)  f32   -- [W_logistic; W_softmax]
    # bc_ref: (2m, 1)  f32
    # o_ref : (1, TB)  f32   -- lane-dense output tile
    xt = xt_ref[...].astype(jnp.float32)                                     # (F, TB)
    zc = jnp.dot(wc_ref[...], xt, preferred_element_type=jnp.float32)        # (2m, TB)
    zc = zc + bc_ref[...]

    zl = zc[:m, :]                                                           # (m, TB) logistic logits
    zs = zc[m:, :]                                                           # (m, TB) softmax logits

    logistic = jax.nn.sigmoid(zl)                                            # (m, TB)

    zmax = jnp.max(zs, axis=0, keepdims=True)                                # (1, TB)
    e = jnp.exp(zs - zmax)                                                   # (m, TB)
    soft = e * pl.reciprocal(jnp.sum(e, axis=0, keepdims=True), approx=False)

    # Mixture-weighted sum over the m (sublane) axis -> lane-dense (1, TB) store.
    o_ref[...] = jnp.sum(logistic * soft, axis=0, keepdims=True)


def lsplm_forward(x, w_logistic, b_logistic, w_softmax, b_softmax, *, tile_b=4096):
    """x: (B, F) any numeric dtype; weights: (m, F) PyTorch layout; biases: (m,)."""
    B, F = x.shape
    m = w_logistic.shape[0]

    # Fuse the two Linear layers into one weight / bias (single MXU pass per tile).
    wc = jnp.concatenate([w_logistic, w_softmax], axis=0).astype(jnp.float32)      # (2m, F)
    bc = jnp.concatenate([b_logistic, b_softmax], axis=0).astype(jnp.float32)
    bc = bc.reshape(2 * m, 1)                                                      # (2m, 1)

    # Batch-on-lanes: x^T in bf16 (exact for small-integer inputs), padded to the tile.
    tb = min(tile_b, _round_up(B, 128))
    b_pad = _round_up(B, tb)
    xt = x.astype(jnp.bfloat16).T                                                  # (F, B)
    if b_pad != B:
        xt = jnp.pad(xt, ((0, 0), (0, b_pad - B)))                                 # zero-pad lanes

    grid = (b_pad // tb,)
    out = pl.pallas_call(
        functools.partial(_lsplm_kernel, m=m),
        out_shape=jax.ShapeDtypeStruct((1, b_pad), jnp.float32),
        grid=grid,
        in_specs=[
            pl.BlockSpec((F, tb), lambda i: (0, i)),        # x^T tile (double-buffered)
            pl.BlockSpec((2 * m, F), lambda i: (0, 0)),     # fused weights (VMEM-resident)
            pl.BlockSpec((2 * m, 1), lambda i: (0, 0)),     # fused biases  (VMEM-resident)
        ],
        out_specs=pl.BlockSpec((1, tb), lambda i: (0, i)),  # lane-dense output tile
        compiler_params=pltpu.CompilerParams(
            dimension_semantics=("parallel",),              # megacore sharding on v7x
            vmem_limit_bytes=32 * 1024 * 1024,              # ample headroom on v5e/v6e/v7x
        ),
        cost_estimate=pl.CostEstimate(
            flops=2 * b_pad * F * 2 * m,
            transcendentals=3 * b_pad * m,
            bytes_accessed=b_pad * F * 2 + b_pad * 4 + (2 * m * F + 2 * m) * 4,
        ),
    )(xt, wc, bc)
    return out[0, :B]                                        # (B,) float32


def _reference(x, w_l, b_l, w_s, b_s):
    xf = x.astype(jnp.float32)
    zl = xf @ w_l.T + b_l
    zs = xf @ w_s.T + b_s
    logistic = jax.nn.sigmoid(zl)
    soft = jax.nn.softmax(zs, axis=1)
    return jnp.sum(logistic * soft, axis=1).astype(jnp.float32)


if __name__ == "__main__":
    # Module config: field_dims sum to feature_num, m mixture components.
    field_dims = [4, 8, 4, 16]
    feature_num = sum(field_dims)      # 32
    m = 8
    batch = 8

    key = jax.random.PRNGKey(0)
    kx, kwl, kbl, kws, kbs = jax.random.split(key, 5)

    # Deterministic "LongTensor"-like inputs (the module casts them to float anyway).
    x = jax.random.randint(kx, (batch, feature_num), minval=0, maxval=3, dtype=jnp.int32)

    # Deterministic parameter init (shapes per nn.Linear(feature_num, m)).
    bound = 1.0 / (feature_num ** 0.5)
    w_logistic = jax.random.uniform(kwl, (m, feature_num), minval=-bound, maxval=bound)
    b_logistic = jax.random.uniform(kbl, (m,), minval=-bound, maxval=bound)
    w_softmax = jax.random.uniform(kws, (m, feature_num), minval=-bound, maxval=bound)
    b_softmax = jax.random.uniform(kbs, (m,), minval=-bound, maxval=bound)

    out = lsplm_forward(x, w_logistic, b_logistic, w_softmax, b_softmax)
    jax.block_until_ready(out)
    ref = _reference(x, w_logistic, b_logistic, w_softmax, b_softmax)
    assert out.shape == (batch,) and out.dtype == jnp.float32
    assert jnp.allclose(out, ref, atol=1e-5, rtol=1e-5), (out, ref)

    # Exercise the multi-tile grid + batch-padding path with a non-aligned batch.
    batch2 = 300
    x2 = jax.random.randint(kx, (batch2, feature_num), minval=0, maxval=3, dtype=jnp.int32)
    out2 = lsplm_forward(x2, w_logistic, b_logistic, w_softmax, b_softmax, tile_b=128)
    jax.block_until_ready(out2)
    ref2 = _reference(x2, w_logistic, b_logistic, w_softmax, b_softmax)
    assert out2.shape == (batch2,) and out2.dtype == jnp.float32
    assert jnp.allclose(out2, ref2, atol=1e-5, rtol=1e-5), (out2, ref2)

    print("KERNEL_OK")
</pallas_src>

<mosaic_0001>
module attributes {stable_mosaic.version = 11 : i64} {
  func.func @_lsplm_kernel(%arg0: i32, %arg1: memref<32x128xbf16, #tpu.memory_space<vmem>>, %arg2: memref<16x32xf32, #tpu.memory_space<vmem>>, %arg3: memref<16x1xf32, #tpu.memory_space<vmem>>, %arg4: memref<1x128xf32, #tpu.memory_space<vmem>>) attributes {dimension_semantics = [#tpu.dimension_semantics<parallel>], iteration_bounds = array<i64: 1>, scalar_prefetch = 0 : i64, scratch_operands = 0 : i64, tpu.core_type = #tpu.core_type<tc>, window_params = [{transform_indices = @transform_0, window_bounds = array<i64: 32, 128>}, {pipeline_mode = #tpu.pipeline_mode<synchronous>, transform_indices = @transform_1, window_bounds = array<i64: 16, 32>}, {pipeline_mode = #tpu.pipeline_mode<synchronous>, transform_indices = @transform_2, window_bounds = array<i64: 16, 1>}, {transform_indices = @transform_3, window_bounds = array<i64: 1, 128>}]} {
    %c0 = arith.constant 0 : index
    %c0_0 = arith.constant 0 : index
    %0 = vector.load %arg1[%c0, %c0_0] : memref<32x128xbf16, #tpu.memory_space<vmem>>, vector<32x128xbf16>
    %1 = arith.extf %0 : vector<32x128xbf16> to vector<32x128xf32>
    %c0_1 = arith.constant 0 : index
    %c0_2 = arith.constant 0 : index
    %2 = vector.load %arg2[%c0_1, %c0_2] : memref<16x32xf32, #tpu.memory_space<vmem>>, vector<16x32xf32>
    %cst = arith.constant dense<0.000000e+00> : vector<16x128xf32>
    %3 = tpu.matmul %2, %1, %cst {dimension_numbers = #tpu.dot_dimension_numbers<[1], [0], [0], [1], [0, 0, 1, 1], [], []>} : vector<16x32xf32>, vector<32x128xf32>, vector<16x128xf32> -> vector<16x128xf32>
    %c0_3 = arith.constant 0 : index
    %c0_4 = arith.constant 0 : index
    %4 = vector.load %arg3[%c0_3, %c0_4] : memref<16x1xf32, #tpu.memory_space<vmem>>, vector<16x1xf32>
    %5 = vector.broadcast %4 : vector<16x1xf32> to vector<16x128xf32>
    %6 = arith.addf %3, %5 : vector<16x128xf32>
    %7 = vector.extract_strided_slice %6 {offsets = [0, 0], sizes = [8, 128], strides = [1, 1]} : vector<16x128xf32> to vector<8x128xf32>
    %8 = vector.extract_strided_slice %6 {offsets = [8, 0], sizes = [8, 128], strides = [1, 1]} : vector<16x128xf32> to vector<8x128xf32>
    %9 = arith.negf %7 : vector<8x128xf32>
    %10 = math.exp %9 : vector<8x128xf32>
    %cst_5 = arith.constant 1.000000e+00 : f32
    %11 = vector.broadcast %cst_5 : f32 to vector<8x128xf32>
    %12 = arith.addf %11, %10 : vector<8x128xf32>
    %13 = arith.divf %11, %12 : vector<8x128xf32>
    %cst_6 = arith.constant dense<0xFF800000> : vector<128xf32>
    %14 = vector.multi_reduction <maximumf>, %8, %cst_6 [0] : vector<8x128xf32> to vector<128xf32>
    %15 = vector.shape_cast %14 : vector<128xf32> to vector<1x128xf32>
    %16 = vector.broadcast %15 : vector<1x128xf32> to vector<8x128xf32>
    %17 = arith.subf %8, %16 : vector<8x128xf32>
    %18 = math.exp %17 : vector<8x128xf32>
    %cst_7 = arith.constant dense<0.000000e+00> : vector<128xf32>
    %19 = vector.multi_reduction <add>, %18, %cst_7 [0] : vector<8x128xf32> to vector<128xf32>
    %20 = vector.shape_cast %19 : vector<128xf32> to vector<1x128xf32>
    %21 = tpu.reciprocal %20 : vector<1x128xf32> -> vector<1x128xf32>
    %22 = vector.broadcast %21 : vector<1x128xf32> to vector<8x128xf32>
    %23 = arith.mulf %18, %22 : vector<8x128xf32>
    %24 = arith.mulf %13, %23 : vector<8x128xf32>
    %cst_8 = arith.constant dense<0.000000e+00> : vector<128xf32>
    %25 = vector.multi_reduction <add>, %24, %cst_8 [0] : vector<8x128xf32> to vector<128xf32>
    %26 = vector.shape_cast %25 : vector<128xf32> to vector<1x128xf32>
    %c0_9 = arith.constant 0 : index
    %c0_10 = arith.constant 0 : index
    %27 = vector.load %arg4[%c0_9, %c0_10] : memref<1x128xf32, #tpu.memory_space<vmem>>, vector<1x128xf32>
    tpu.vector_store %arg4[%c0_9, %c0_10], %26 {strides = array<i32>} : memref<1x128xf32, #tpu.memory_space<vmem>>, vector<1x128xf32>,
    return
  }
  func.func @transform_0(%arg0: i32) -> (i32, i32) {
    %c0_i32 = arith.constant 0 : i32
    %c0_i32_0 = arith.constant 0 : i32
    return %c0_i32, %arg0 : i32, i32
  }
  func.func @transform_1(%arg0: i32) -> (i32, i32) {
    %c0_i32 = arith.constant 0 : i32
    %c0_i32_0 = arith.constant 0 : i32
    %c0_i32_1 = arith.constant 0 : i32
    return %c0_i32, %c0_i32_0 : i32, i32
  }
  func.func @transform_2(%arg0: i32) -> (i32, i32) {
    %c0_i32 = arith.constant 0 : i32
    %c0_i32_0 = arith.constant 0 : i32
    %c0_i32_1 = arith.constant 0 : i32
    return %c0_i32, %c0_i32_0 : i32, i32
  }
  func.func @transform_3(%arg0: i32) -> (i32, i32) {
    %c0_i32 = arith.constant 0 : i32
    %c0_i32_0 = arith.constant 0 : i32
    return %c0_i32, %arg0 : i32, i32
  }
}

</mosaic_0001>

<bundles_post_ra>
// kernel: tpu_custom_call.1
= control target key start
LH: loop header
LB: loop body
LE: loop exit
PB: predicated region body
PF: predicated region fallthrough
CT: control target
= control target key end

     0   :  { %8 = vsyncpa [#allocation3], 0  ;;  %s339_s0 = inlined_call_operand.vmem [shape: bf16[32,128], index: 0, kind: input, shape index: {}]   ;;  %s340_s1 = inlined_call_operand.hbm [shape: f32[16,32], index: 1, kind: input, shape index: {}]   ;;  %s341_s2 = inlined_call_operand.vmem [shape: f32[16,1], index: 2, kind: input, shape index: {}]   ;;  %s342_s3 = inlined_call_operand.hbm [shape: f32[1,128], index: 3, kind: output, shape index: {}]  }
   0x1   :  { %9 = vsyncpa [#allocation4], 0  ;;  %s278_s12 = smov [#allocation2]   ;;  %s230_s16 = scalar_lea.hbm %s340_s1, 256 }
   0x2   :  { %s17_s13 = sshll.u32 %s278_s12, 4  ;;  %p231_p0 = scmp.ne.s32.totalorder %s340_s1, %s230_s16  ;;  %s18_s13 = int_to_ptr.vmem [resolvable:$true] %s17_s13 }
   0x3   :  { %p234_p1 = scmp.lt.u32.totalorder %s230_s16, %s340_s1 }
   0x5   :  { %p236_p2 = pnand %p234_p1, %p231_p0 }
   0x7   :  { %239 = shalt.err (!%p236_p2)
}
   0x8   :  { %s240_s21 = scalar_lea.vmem %s18_s13, 256  ;;  %p245_p4 = scmp.lt.s32.totalorder %s18_s13, %s18_s13 }
   0x9   :  { %p241_p3 = scmp.ne.s32.totalorder %s18_s13, %s240_s21  ;;  %p246_p5 = scmp.lt.s32.totalorder %s240_s21, %s240_s21 }
   0xb   :  { %p247_p6 = por %p246_p5, %p245_p4 }
   0xd   :  { %p248_p7 = pnand %p247_p6, %p241_p3 }
   0xf   :  { %251 = shalt.err (!%p248_p7)
}
  0x10   :  { %s279_s22 = smov 128   ;;  %s280_s23 = smov 8  }
  0x11   :  { %23 = dma.hbm_to_vmem [thread:$0]  %s340_s1, 256, %s18_s13, [#allocation3], %s279_s22, %s279_s22, %s280_s23  }
  0x12   :  { %274 = dma.done.wait [#allocation3], 256  }
  0x13   :  { %275 = vsyncadd [#allocation3], 4294967040  ;;  %v281_v0 = vmov 0   ;;  %vm51_vm0 = vcmask 261120   ;;  %v183_v1 = vld [vmem:[%s339_s0] sm:$0xff]   ;;  %v190_v2 = vld [vmem:[%s339_s0 + $0x8] sm:$0xff]  }
  0x14   :  { %221 = vset.pattern.permute.xlu0 %v281_v0  ;;  %v37_v3 = vld [vmem:[#allocation2] sm:$0xff]  ;;  %209 = vmatprep.subr.bf16.mxu0 %v183_v1  ;;  %v40_v4 = vld [vmem:[%s341_s2 + $0x8] sm:$0xff]  ;;  %s282_s0 = smov [#allocation5]  }
  0x15   :  { %205 = vmatprep.mubr.msk.f32.mxu0 %vm51_vm0, %v37_v3  ;;  %211 = vmatpush3.bf16.msra.mxu0 %v183_v1  ;;  %v39_v5 = vld [vmem:[%s341_s2] sm:$0xff]  ;;  %v38_v6 = vld [vmem:[#allocation2 + $0x8] sm:$0xff]  ;;  %s170_s2 = sshll.u32 %s282_s0, 4  ;;  %s171_s2 = int_to_ptr.vmem [resolvable:$true] %s170_s2 }
  0x16   :  { %48 = vperm.xlu0 %221, %v40_v4   ;;  %213 = vmatprep.subr.bf16.mxu0 %v190_v2  ;;  %s252_s6 = scalar_lea.vmem %s171_s2, 16  ;;  %s256_s7 = scalar_lea.vmem %s171_s2, 32 }
  0x17   :  { %p253_p8 = scmp.ne.s32.totalorder %s171_s2, %s252_s6  ;;  %p257_p9 = scmp.lt.s32.totalorder %s171_s2, %s171_s2 }
  0x18   :  { %p258_p10 = scmp.lt.s32.totalorder %s256_s7, %s252_s6 }
  0x19   :  { %215 = vmatpush3.bf16.msra.mxu0 %v190_v2 }
  0x1a   :  { %43 = vperm.xlu0 %221, %v39_v5   ;;  %p259_p11 = por %p258_p10, %p257_p9 }
  0x1c   :  { %206 = vmatmul.mubr.msk.f32.vlgmr.msra.gmra.mrb[0].mxu0 %vm51_vm0, %v38_v6  ;;  %p260_p12 = pnand %p259_p11, %p253_p8 }
  0x95   :  { %v49_v7 = vpop.permute.xlu0 %48 }
  0x99   :  { %v44_v18 = vpop.permute.xlu0 %43 }
  0xef   :  { %v207_v8 = vpop.f32.mrb[0].mxu0 }
  0xf0   :  { %v130_v9 = vadd.f32 %v207_v8, %v49_v7  ;;  %v124_v10 = vpop.f32.mrb[1].mxu0 }
  0xf1   :  { %v125_v20 = vadd.f32 %v124_v10, %v44_v18 }
  0xf2   :  { %v139_v11 = vrot.slane %v130_v9, 4 }
  0xf3   :  { %v181_v21 = vmul.f32 -1.442695, %v125_v20 }
  0xf4   :  { %v140_v12 = vmax.f32 %v130_v9, %v139_v11 }
  0xf6   :  { %v141_v13 = vrot.slane %v140_v12, 2 }
  0xf8   :  { %v142_v14 = vmax.f32 %v140_v12, %v141_v13 }
  0xfa   :  { %v143_v15 = vrot.slane %v142_v14, 1 }
  0xfc   :  { %v144_v16 = vmax.f32 %v142_v14, %v143_v15 }
  0xfe   :  { %v145_v17 = vsub.f32 %v130_v9, %v144_v16 }
 0x100   :  { %v146_v19 = vmul.f32 1.442695, %v145_v17 }
 0x102   :  { %222 = vpow2.f32 %v146_v19 }
 0x103   :  { %224 = vpow2.f32 %v181_v21 }
 0x10c   :  { %v223_v22 = vpop.eup %222 }
 0x10d   :  { %v148_v23 = vrot.slane %v223_v22, 4  ;;  %v225_v27 = vpop.eup %224 }
 0x10e   :  { %v136_v29 = vadd.f32 1.0, %v225_v27 }
 0x10f   :  { %v149_v24 = vadd.f32 %v223_v22, %v148_v23 }
 0x111   :  { %v150_v25 = vrot.slane %v149_v24, 2 }
 0x113   :  { %v151_v26 = vadd.f32 %v150_v25, %v149_v24 }
 0x115   :  { %v152_v28 = vrot.slane %v151_v26, 1 }
 0x117   :  { %v153_v30 = vadd.f32 %v152_v28, %v151_v26 }
 0x119   :  { %226 = vrcp.f32 %v153_v30 }
 0x11a   :  { %228 = vrcp.f32 %v136_v29 }
 0x123   :  { %v227_v31 = vpop.eup %226 }
 0x124   :  { %v155_v32 = vmul.f32 %v227_v31, %v223_v22  ;;  %v229_v33 = vpop.eup %228 }
 0x126   :  { %v156_v34 = vmul.f32 %v229_v33, %v155_v32 }
 0x128   :  { %v157_v35 = vrot.slane %v156_v34, 4 }
 0x12a   :  { %v158_v36 = vadd.f32 %v157_v35, %v156_v34 }
 0x12c   :  { %v159_v37 = vrot.slane %v158_v36, 2 }
 0x12e   :  { %v160_v38 = vadd.f32 %v159_v37, %v158_v36 }
 0x130   :  { %v161_v39 = vrot.slane %v160_v38, 1 }
 0x132   :  { %v162_v40 = vadd.f32 %v161_v39, %v160_v38 }
 0x134   :  { %163 = vst [vmem:[#allocation5] sm:$0x1] %v162_v40 }
 0x135   :  { %263 = shalt.err (!%p260_p12)
}
 0x136   :  { %s264_s10 = scalar_lea.hbm %s342_s3, 16 }
 0x137   :  { %p265_p13 = scmp.ne.s32.totalorder %s342_s3, %s264_s10  ;;  %p268_p0 = scmp.lt.u32.totalorder %s264_s10, %s342_s3 }
 0x139   :  { %p270_p1 = pnand %p268_p0, %p265_p13 }
 0x13b   :  { %273 = shalt.err (!%p270_p1)
}
 0x13c   :  { %173 = dma.vmem_to_hbm [thread:$0]  %s171_s2, 16, %s342_s3, [#allocation4]  }
 0x13d   :  { %276 = dma.done.wait [#allocation4], 16  }
 0x13e   :  { %277 = vsyncadd [#allocation4], 4294967280 }
 0x13f   :  { %177 = vsyncpa [#allocation3], 1 }
 0x140   :  { %178 = vsyncpa [#allocation4], 1 }

</bundles_post_ra>
